<compile_context>
chip_gen: v5e
topology: v5e:2x2
jax: 0.10.0
libtpu: 0.0.40
codegen_flags: <defaults>
</compile_context>

<pallas_src>
import jax
import jax.numpy as jnp
from jax.experimental import pallas as pl
from jax.experimental.pallas import tpu as pltpu


# ----------------------------------------------------------------------------
# Kernel: broadcasted add of a (1, ...) pe window onto a (b_tile, ...) x tile.
# Works for both the 3D and the flattened 2D layouts.
# ----------------------------------------------------------------------------
def _pe_add_kernel(x_ref, pe_ref, o_ref):
    o_ref[...] = (x_ref[...] + pe_ref[...]).astype(o_ref.dtype)


# ----------------------------------------------------------------------------
# __init__ equivalent: deterministic sin/cos buffer, built once in the
# model's compute dtype (no per-forward astype).
# ----------------------------------------------------------------------------
def make_positional_encoding_buffer(d_model, max_len=1024, dtype=jnp.float32):
    assert d_model % 2 == 0, "d_model must be even (same limitation as the PyTorch reference)"
    position = jnp.arange(0, max_len, dtype=jnp.float32)[:, None]             # (max_len, 1)
    div_term = jnp.exp(
        jnp.arange(0, d_model, 2, dtype=jnp.float32)
        * (-jnp.log(jnp.float32(10000.0)) / d_model)
    )                                                                          # (d_model/2,)
    pe = jnp.zeros((max_len, d_model), dtype=jnp.float32)
    pe = pe.at[:, 0::2].set(jnp.sin(position * div_term))
    pe = pe.at[:, 1::2].set(jnp.cos(position * div_term))
    return pe[None, :, :].astype(dtype)                                        # (1, max_len, d_model)


# ----------------------------------------------------------------------------
# VMEM sizing helpers
# ----------------------------------------------------------------------------
def _vmem_limit_and_budget():
    """Generation-aware scoped-VMEM request + the share we spend on tiles."""
    try:
        cap = getattr(pltpu.get_tpu_info(), "vmem_capacity_bytes", None)
    except Exception:
        cap = None
    if not cap:
        cap = 64 * 1024 * 1024                      # v7x per-TC floor
    vmem_limit = min(cap // 2, 48 * 1024 * 1024)    # 48 MiB on v5e/v6e, 32 MiB on v7x
    tile_budget = (vmem_limit * 3) // 4             # headroom for compiler scratch
    return vmem_limit, tile_budget


def _round_down(x, m):
    return max(m, (x // m) * m)


def _pick_tiles_flat(B, SD, itemsize, tile_budget, out_bytes):
    """(b_tile, col_tile) for the flattened (B, S*D) layout."""
    sub_rows = max(8, 32 // itemsize)               # packed sublane rows: 8 f32 / 16 bf16 / 32 i8
    b_tile = B if B <= sub_rows else sub_rows
    # Double-buffered x + out tiles plus the sublane-padded (sub_rows, col) pe tile.
    denom = 2 * itemsize * (2 * b_tile + sub_rows)
    max_cols = max(128, tile_budget // denom)
    col_tile = SD if SD <= max_cols else _round_down(max_cols, 128)
    # Megacore: keep >= 2 blocks on a parallel axis when the work is non-trivial.
    if col_tile >= SD and b_tile >= B and out_bytes >= (4 << 20) and SD >= 256:
        col_tile = _round_down(pl.cdiv(SD, 2), 128)
    return b_tile, col_tile


def _pick_tiles_3d(B, S, D, itemsize, tile_budget, out_bytes):
    """(b_tile, s_tile) for the (B, S, D) layout with full-D blocks."""
    sub_rows = max(8, 32 // itemsize)
    b_tile = B if B <= 8 else 8
    # Double-buffered x + out tiles plus the (1, s_tile, D) pe tile (no padding).
    denom = 2 * itemsize * D * (2 * b_tile + 1)
    max_s = max(sub_rows, tile_budget // denom)
    s_tile = S if S <= max_s else _round_down(max_s, sub_rows)
    if s_tile >= S and b_tile >= B and out_bytes >= (4 << 20) and S >= 2 * sub_rows:
        s_tile = _round_down(pl.cdiv(S, 2), sub_rows)
    return b_tile, s_tile


# ----------------------------------------------------------------------------
# forward: x (B, S, D) + pe[:, :S, :]
# ----------------------------------------------------------------------------
def positional_encoding_forward(x, pe, *, donate_x=False):
    B, S, D = x.shape
    assert pe.ndim == 3 and pe.shape[0] == 1 and pe.shape[2] == D and S <= pe.shape[1]
    max_len = pe.shape[1]

    itemsize = jnp.dtype(x.dtype).itemsize
    out_bytes = B * S * D * itemsize
    vmem_limit, tile_budget = _vmem_limit_and_budget()

    cost = pl.CostEstimate(
        flops=B * S * D,
        transcendentals=0,
        bytes_accessed=(2 * B * S * D + S * D) * itemsize,
    )
    compiler_params = pltpu.CompilerParams(
        dimension_semantics=("parallel", "parallel"),
        vmem_limit_bytes=vmem_limit,
    )
    # Only alias when the caller actually donates x; otherwise XLA would insert
    # a defensive full copy and the alias becomes a net loss.
    io_alias = {0: 0} if donate_x else {}

    if D % 128 == 0:
        # 3D path: lane-dense full-D blocks, pe windowed in place (no copy).
        b_tile, s_tile = _pick_tiles_3d(B, S, D, itemsize, tile_budget, out_bytes)
        grid = (pl.cdiv(S, s_tile), pl.cdiv(B, b_tile))   # seq outer, batch inner
        return pl.pallas_call(
            _pe_add_kernel,
            out_shape=jax.ShapeDtypeStruct((B, S, D), x.dtype),
            grid=grid,
            in_specs=[
                pl.BlockSpec((b_tile, s_tile, D), lambda s, b: (b, s, 0)),   # x tile
                pl.BlockSpec((1, s_tile, D), lambda s, b: (0, s, 0)),        # pe window
            ],
            out_specs=pl.BlockSpec((b_tile, s_tile, D), lambda s, b: (b, s, 0)),
            input_output_aliases=io_alias,
            compiler_params=compiler_params,
            cost_estimate=cost,
        )(x, pe)

    # Fallback (D not a multiple of 128): flatten to lane-dense 2D slabs.
    # Both reshapes are free metadata ops on contiguous row-major buffers; the
    # first S*D columns of the flattened pe buffer are exactly pe[:, :S, :],
    # so no per-call slice materialization is needed.
    SD = S * D
    x2 = x.reshape(B, SD)
    pe2 = pe.reshape(1, max_len * D)

    b_tile, col_tile = _pick_tiles_flat(B, SD, itemsize, tile_budget, out_bytes)
    grid = (pl.cdiv(SD, col_tile), pl.cdiv(B, b_tile))    # columns outer, batch inner

    out2 = pl.pallas_call(
        _pe_add_kernel,
        out_shape=jax.ShapeDtypeStruct((B, SD), x.dtype),
        grid=grid,
        in_specs=[
            pl.BlockSpec((b_tile, col_tile), lambda j, b: (b, j)),   # x tile
            pl.BlockSpec((1, col_tile), lambda j, b: (0, j)),        # pe window
        ],
        out_specs=pl.BlockSpec((b_tile, col_tile), lambda j, b: (b, j)),
        input_output_aliases=io_alias,
        compiler_params=compiler_params,
        cost_estimate=cost,
    )(x2, pe2)
    return out2.reshape(B, S, D)


if __name__ == "__main__":
    key = jax.random.PRNGKey(0)
    max_len = 1024

    # Case 1: small D (not a multiple of 128) -> flattened lane-dense path.
    B, S, D = 2, 8, 32
    x = jax.random.normal(key, (B, S, D), dtype=jnp.float32)
    pe = make_positional_encoding_buffer(D, max_len=max_len, dtype=jnp.float32)
    out = jax.block_until_ready(positional_encoding_forward(x, pe))
    ref = x + pe[:, :S, :]
    assert out.shape == (B, S, D)
    assert jnp.allclose(out, ref, atol=1e-6, rtol=1e-6)

    # Case 2: D multiple of 128 -> 3D path (no pe slice / padding).
    B2, S2, D2 = 2, 16, 128
    x2 = jax.random.normal(jax.random.PRNGKey(0), (B2, S2, D2), dtype=jnp.float32)
    pe2 = make_positional_encoding_buffer(D2, max_len=max_len, dtype=jnp.float32)
    out2 = jax.block_until_ready(positional_encoding_forward(x2, pe2))
    ref2 = x2 + pe2[:, :S2, :]
    assert out2.shape == (B2, S2, D2)
    assert jnp.allclose(out2, ref2, atol=1e-6, rtol=1e-6)

    print("KERNEL_OK")
</pallas_src>

<mosaic_0001>
module attributes {stable_mosaic.version = 11 : i64} {
  func.func @_pe_add_kernel(%arg0: i32, %arg1: i32, %arg2: memref<2x256xf32, #tpu.memory_space<vmem>>, %arg3: memref<1x256xf32, #tpu.memory_space<vmem>>, %arg4: memref<2x256xf32, #tpu.memory_space<vmem>>) attributes {dimension_semantics = [#tpu.dimension_semantics<parallel>, #tpu.dimension_semantics<parallel>], iteration_bounds = array<i64: 1, 1>, scalar_prefetch = 0 : i64, scratch_operands = 0 : i64, tpu.core_type = #tpu.core_type<tc>, window_params = [{transform_indices = @transform_0, window_bounds = array<i64: 2, 256>}, {transform_indices = @transform_1, window_bounds = array<i64: 1, 256>}, {transform_indices = @transform_2, window_bounds = array<i64: 2, 256>}]} {
    %c0 = arith.constant 0 : index
    %c0_0 = arith.constant 0 : index
    %0 = vector.load %arg2[%c0, %c0_0] : memref<2x256xf32, #tpu.memory_space<vmem>>, vector<2x256xf32>
    %c0_1 = arith.constant 0 : index
    %c0_2 = arith.constant 0 : index
    %1 = vector.load %arg3[%c0_1, %c0_2] : memref<1x256xf32, #tpu.memory_space<vmem>>, vector<1x256xf32>
    %2 = vector.broadcast %1 : vector<1x256xf32> to vector<2x256xf32>
    %3 = arith.addf %0, %2 : vector<2x256xf32>
    %c0_3 = arith.constant 0 : index
    %c0_4 = arith.constant 0 : index
    %4 = vector.load %arg4[%c0_3, %c0_4] : memref<2x256xf32, #tpu.memory_space<vmem>>, vector<2x256xf32>
    tpu.vector_store %arg4[%c0_3, %c0_4], %3 {strides = array<i32>} : memref<2x256xf32, #tpu.memory_space<vmem>>, vector<2x256xf32>,
    return
  }
  func.func @transform_0(%arg0: i32, %arg1: i32) -> (i32, i32) {
    %c0_i32 = arith.constant 0 : i32
    return %arg1, %arg0 : i32, i32
  }
  func.func @transform_1(%arg0: i32, %arg1: i32) -> (i32, i32) {
    %c0_i32 = arith.constant 0 : i32
    %c0_i32_0 = arith.constant 0 : i32
    return %c0_i32, %arg0 : i32, i32
  }
  func.func @transform_2(%arg0: i32, %arg1: i32) -> (i32, i32) {
    %c0_i32 = arith.constant 0 : i32
    return %arg1, %arg0 : i32, i32
  }
}

</mosaic_0001>

<bundles_post_ra>
// kernel: tpu_custom_call.1
= control target key start
LH: loop header
LB: loop body
LE: loop exit
PB: predicated region body
PF: predicated region fallthrough
CT: control target
= control target key end

     0   :  { %7 = vsyncpa [#allocation3], 0  ;;  %s177_s0 = inlined_call_operand.hbm [shape: f32[2,256], index: 0, kind: input, shape index: {}]   ;;  %s178_s1 = inlined_call_operand.hbm [shape: f32[1,32768], index: 1, kind: input, shape index: {}]   ;;  %s179_s2 = inlined_call_operand.hbm [shape: f32[2,256], index: 2, kind: output, shape index: {}]  }
   0x1   :  { %8 = vsyncpa [#allocation6], 0 }
   0x2   :  { %9 = vsyncpa [#allocation4], 0  ;;  %s15_s11 = sshll.u32 %s177_s0, 4  ;;  %s150_s12 = smov [#allocation2]   ;;  %s16_s11 = int_to_ptr.hbm [resolvable:$true] %s15_s11 }
   0x3   :  { %s17_s13 = sshll.u32 %s150_s12, 4  ;;  %s26_s16 = sshll.u32 %s178_s1, 4  ;;  %s18_s13 = int_to_ptr.vmem [resolvable:$true] %s17_s13  ;;  %s27_s16 = int_to_ptr.hbm [resolvable:$true] %s26_s16 }
   0x4   :  { %20 = dma.hbm_to_vmem [thread:$0]  %s16_s11, 64, %s18_s13, [#allocation3]  }
   0x5   :  { %s151_s17 = smov [#allocation5]  }
   0x6   :  { %s28_s18 = sshll.u32 %s151_s17, 4  ;;  %s29_s18 = int_to_ptr.vmem [resolvable:$true] %s28_s18 }
   0x7   :  { %31 = dma.hbm_to_vmem [thread:$0]  %s27_s16, 32, %s29_s18, [#allocation6]  }
   0x8   :  { %144 = dma.done.wait [#allocation3], 64  }
   0x9   :  { %145 = vsyncadd [#allocation3], 4294967232 }
   0xa   :  { %146 = dma.done.wait [#allocation6], 32  }
   0xb   :  { %147 = vsyncadd [#allocation6], 4294967264  ;;  %v41_v0 = vld [vmem:[#allocation5] sm:$0x3]  ;;  %vm46_vm0 = vcmask 1041408   ;;  %s152_s0 = smov [#allocation7]  }
   0xc   :  { %v43_v1 = vperm.slane %v41_v0, 0  ;;  %v44_v2 = vperm.slane %v41_v0, 1  ;;  %v40_v3 = vld [vmem:[#allocation2] sm:$0xf]  ;;  %s56_s19 = sshll.u32 %s152_s0, 4  ;;  %s58_s21 = sshll.u32 %s179_s2, 4  ;;  %s57_s19 = int_to_ptr.vmem [resolvable:$true] %s56_s19  ;;  %s59_s21 = int_to_ptr.hbm [resolvable:$true] %s58_s21 }
   0xe   :  { %v45_v4 = vrot.slane %v44_v2, 6 }
  0x10   :  { %v47_v5 = vsel %vm46_vm0, %v43_v1, %v45_v4 }
  0x11   :  { %v49_v6 = vadd.f32 %v47_v5, %v40_v3 }
  0x13   :  { %50 = vst [vmem:[#allocation7] sm:$0xf] %v49_v6 }
  0x14   :  { %61 = dma.vmem_to_hbm [thread:$0]  %s57_s19, 64, %s59_s21, [#allocation4]  }
  0x15   :  { %148 = dma.done.wait [#allocation4], 64  }
  0x16   :  { %149 = vsyncadd [#allocation4], 4294967232 }
  0x17   :  { %66 = vsyncpa [#allocation3], 1 }
  0x18   :  { %67 = vsyncpa [#allocation6], 1 }
  0x19   :  { %68 = vsyncpa [#allocation4], 1 }

</bundles_post_ra>
